<compile_context>
chip_gen: v5e
topology: v5e:2x2
jax: 0.10.0
libtpu: 0.0.40
codegen_flags: <defaults>
</compile_context>

<pallas_src>
import jax
import jax.numpy as jnp
from jax.experimental import pallas as pl
from jax.experimental.pallas import tpu as pltpu


def simplenet_kernel(x_ref, w1_ref, b1_ref, w2t_ref, b2_ref, o_ref):
    # ---- fc1 + ReLU ----------------------------------------------------
    # K == input_dim is tiny (2), so avoid the MXU fill/drain entirely:
    # unrolled VPU broadcast FMAs over the K columns.
    x = x_ref[...]            # (bt, K)
    w1 = w1_ref[...]          # (K, H)
    h = b1_ref[...]           # (1, H), broadcasts over batch rows
    for k in range(x.shape[1]):       # static, unrolled at trace time
        h = h + x[:, k:k + 1] * w1[k:k + 1, :]
    h = jnp.maximum(h, 0.0)           # (bt, H)

    # ---- dropout(p=0.2): identity in eval mode --------------------------

    # ---- fc2 + ReLU ------------------------------------------------------
    # N == output_dim == 1: VPU multiply + lane reduction (XLU) instead of a
    # one-column MXU matmul. w2t is pre-transposed to (1, H) in the wrapper.
    y = jnp.sum(h * w2t_ref[...], axis=-1, keepdims=True) + b2_ref[...]
    y = jnp.maximum(y, 0.0)           # (bt, 1)

    # ---- Sigmoid ---------------------------------------------------------
    # exp -> EUP; reciprocal -> EUP vrcp (approx), keeping the VALU slots free.
    o_ref[...] = pl.reciprocal(1.0 + jnp.exp(-y), approx=True).astype(o_ref.dtype)


def simplenet_forward(x, w1, b1, w2, b2, *, b_tile=128):
    """x: (B, input_dim) f32; w1: (in, hid); b1: (1, hid); w2: (hid, out); b2: (1, out)."""
    B, input_dim = x.shape
    hidden_dim = w1.shape[1]
    output_dim = w2.shape[1]

    # Pre-transpose fc2 weight to (out, hid) = (1, hid) in the wrapper so the
    # kernel does a lane-wise multiply+reduce with no in-kernel relayout.
    w2t = w2.T  # (output_dim, hidden_dim)

    # Pick a batch tile: multiple of 8 (sublane), capped at b_tile.
    if B <= b_tile:
        bt = max(8, ((B + 7) // 8) * 8)
    else:
        bt = b_tile
    Bp = pl.cdiv(B, bt) * bt
    if Bp != B:
        x = jnp.pad(x, ((0, Bp - B), (0, 0)))

    grid = (Bp // bt,)

    # Tiny advisory cost estimate (keeps XLA from over-provisioning around a
    # microsecond-scale kernel).
    flops = Bp * (2 * input_dim * hidden_dim + 2 * hidden_dim + 2 * output_dim)
    transcendentals = Bp * output_dim * 2  # exp + reciprocal
    bytes_accessed = 4 * (
        Bp * input_dim
        + input_dim * hidden_dim
        + 2 * hidden_dim
        + output_dim
        + Bp * output_dim
    )

    out = pl.pallas_call(
        simplenet_kernel,
        out_shape=jax.ShapeDtypeStruct((Bp, output_dim), jnp.float32),
        grid_spec=pltpu.PrefetchScalarGridSpec(
            num_scalar_prefetch=0,
            grid=grid,
            in_specs=[
                # batch tile marches with the grid
                pl.BlockSpec((bt, input_dim), lambda i: (i, 0)),
                # weights / biases: constant block index -> resident in VMEM
                pl.BlockSpec((input_dim, hidden_dim), lambda i: (0, 0)),
                pl.BlockSpec((1, hidden_dim), lambda i: (0, 0)),
                pl.BlockSpec((output_dim, hidden_dim), lambda i: (0, 0)),
                pl.BlockSpec((1, output_dim), lambda i: (0, 0)),
            ],
            out_specs=pl.BlockSpec((bt, output_dim), lambda i: (i, 0)),
        ),
        compiler_params=pltpu.CompilerParams(
            dimension_semantics=("parallel",),  # shards batch across TCs on v7x
        ),
        cost_estimate=pl.CostEstimate(
            flops=flops,
            transcendentals=transcendentals,
            bytes_accessed=bytes_accessed,
        ),
    )(x, w1, b1, w2t, b2)

    return out[:B]


def init_params(key, input_dim, hidden_dim, output_dim):
    """Deterministic init matching nn.Linear's U(-1/sqrt(fan_in), 1/sqrt(fan_in))."""
    k1, k2, k3, k4 = jax.random.split(key, 4)
    bound1 = 1.0 / jnp.sqrt(input_dim)
    bound2 = 1.0 / jnp.sqrt(hidden_dim)
    w1 = jax.random.uniform(k1, (input_dim, hidden_dim), jnp.float32, -bound1, bound1)
    b1 = jax.random.uniform(k2, (1, hidden_dim), jnp.float32, -bound1, bound1)
    w2 = jax.random.uniform(k3, (hidden_dim, output_dim), jnp.float32, -bound2, bound2)
    b2 = jax.random.uniform(k4, (1, output_dim), jnp.float32, -bound2, bound2)
    return w1, b1, w2, b2


if __name__ == "__main__":
    # Moon data style: 2 input features, hidden layer, single sigmoid output.
    # Batch large enough to exercise the batch-tiled grid (4 tiles of 128).
    batch, input_dim, hidden_dim, output_dim = 512, 2, 32, 1

    key = jax.random.PRNGKey(0)
    kx, kp = jax.random.split(key)
    x = jax.random.normal(kx, (batch, input_dim), jnp.float32)
    w1, b1, w2, b2 = init_params(kp, input_dim, hidden_dim, output_dim)

    out = simplenet_forward(x, w1, b1, w2, b2, b_tile=128)
    out = jax.block_until_ready(out)

    # Pure-JAX reference (dropout = identity in eval mode).
    ref = jax.nn.sigmoid(
        jnp.maximum(jnp.maximum(x @ w1 + b1, 0.0) @ w2 + b2, 0.0)
    )
    assert out.shape == (batch, output_dim)
    # Slightly relaxed tolerance: approx EUP reciprocal in the sigmoid.
    assert jnp.allclose(out, ref, atol=2e-3, rtol=2e-3)

    print("KERNEL_OK")
</pallas_src>

<mosaic_0001>
module attributes {stable_mosaic.version = 11 : i64} {
  func.func @simplenet_kernel(%arg0: i32, %arg1: memref<128x2xf32, #tpu.memory_space<vmem>>, %arg2: memref<2x32xf32, #tpu.memory_space<vmem>>, %arg3: memref<1x32xf32, #tpu.memory_space<vmem>>, %arg4: memref<1x32xf32, #tpu.memory_space<vmem>>, %arg5: memref<1x1xf32, #tpu.memory_space<vmem>>, %arg6: memref<128x1xf32, #tpu.memory_space<vmem>>) attributes {dimension_semantics = [#tpu.dimension_semantics<parallel>], iteration_bounds = array<i64: 4>, scalar_prefetch = 0 : i64, scratch_operands = 0 : i64, tpu.core_type = #tpu.core_type<tc>, window_params = [{transform_indices = @transform_0, window_bounds = array<i64: 128, 2>}, {pipeline_mode = #tpu.pipeline_mode<synchronous>, transform_indices = @transform_1, window_bounds = array<i64: 2, 32>}, {pipeline_mode = #tpu.pipeline_mode<synchronous>, transform_indices = @transform_2, window_bounds = array<i64: 1, 32>}, {pipeline_mode = #tpu.pipeline_mode<synchronous>, transform_indices = @transform_3, window_bounds = array<i64: 1, 32>}, {pipeline_mode = #tpu.pipeline_mode<synchronous>, transform_indices = @transform_4, window_bounds = array<i64: 1, 1>}, {transform_indices = @transform_5, window_bounds = array<i64: 128, 1>}]} {
    %c0 = arith.constant 0 : index
    %c0_0 = arith.constant 0 : index
    %0 = vector.load %arg1[%c0, %c0_0] : memref<128x2xf32, #tpu.memory_space<vmem>>, vector<128x2xf32>
    %c0_1 = arith.constant 0 : index
    %c0_2 = arith.constant 0 : index
    %1 = vector.load %arg2[%c0_1, %c0_2] : memref<2x32xf32, #tpu.memory_space<vmem>>, vector<2x32xf32>
    %c0_3 = arith.constant 0 : index
    %c0_4 = arith.constant 0 : index
    %2 = vector.load %arg3[%c0_3, %c0_4] : memref<1x32xf32, #tpu.memory_space<vmem>>, vector<1x32xf32>
    %3 = vector.extract_strided_slice %0 {offsets = [0, 0], sizes = [128, 1], strides = [1, 1]} : vector<128x2xf32> to vector<128x1xf32>
    %4 = vector.extract_strided_slice %1 {offsets = [0, 0], sizes = [1, 32], strides = [1, 1]} : vector<2x32xf32> to vector<1x32xf32>
    %5 = vector.broadcast %3 : vector<128x1xf32> to vector<128x32xf32>
    %6 = vector.broadcast %4 : vector<1x32xf32> to vector<128x32xf32>
    %7 = arith.mulf %5, %6 : vector<128x32xf32>
    %8 = vector.broadcast %2 : vector<1x32xf32> to vector<128x32xf32>
    %9 = arith.addf %8, %7 : vector<128x32xf32>
    %10 = vector.extract_strided_slice %0 {offsets = [0, 1], sizes = [128, 1], strides = [1, 1]} : vector<128x2xf32> to vector<128x1xf32>
    %11 = vector.extract_strided_slice %1 {offsets = [1, 0], sizes = [1, 32], strides = [1, 1]} : vector<2x32xf32> to vector<1x32xf32>
    %12 = vector.broadcast %10 : vector<128x1xf32> to vector<128x32xf32>
    %13 = vector.broadcast %11 : vector<1x32xf32> to vector<128x32xf32>
    %14 = arith.mulf %12, %13 : vector<128x32xf32>
    %15 = arith.addf %9, %14 : vector<128x32xf32>
    %cst = arith.constant 0.000000e+00 : f32
    %16 = vector.broadcast %cst : f32 to vector<128x32xf32>
    %17 = arith.maximumf %15, %16 : vector<128x32xf32>
    %c0_5 = arith.constant 0 : index
    %c0_6 = arith.constant 0 : index
    %18 = vector.load %arg4[%c0_5, %c0_6] : memref<1x32xf32, #tpu.memory_space<vmem>>, vector<1x32xf32>
    %19 = vector.broadcast %18 : vector<1x32xf32> to vector<128x32xf32>
    %20 = arith.mulf %17, %19 : vector<128x32xf32>
    %cst_7 = arith.constant dense<0.000000e+00> : vector<128xf32>
    %21 = vector.multi_reduction <add>, %20, %cst_7 [1] : vector<128x32xf32> to vector<128xf32>
    %22 = vector.shape_cast %21 : vector<128xf32> to vector<128x1xf32>
    %c0_8 = arith.constant 0 : index
    %c0_9 = arith.constant 0 : index
    %23 = vector.load %arg5[%c0_8, %c0_9] : memref<1x1xf32, #tpu.memory_space<vmem>>, vector<1x1xf32>
    %24 = vector.broadcast %23 : vector<1x1xf32> to vector<128x1xf32>
    %25 = arith.addf %22, %24 : vector<128x1xf32>
    %cst_10 = arith.constant 0.000000e+00 : f32
    %26 = vector.broadcast %cst_10 : f32 to vector<128x1xf32>
    %27 = arith.maximumf %25, %26 : vector<128x1xf32>
    %cst_11 = arith.constant 0.000000e+00 : f32
    %28 = vector.broadcast %cst_11 : f32 to vector<128x1xf32>
    %29 = arith.subf %28, %27 : vector<128x1xf32>
    %30 = math.exp %29 : vector<128x1xf32>
    %cst_12 = arith.constant 1.000000e+00 : f32
    %31 = vector.broadcast %cst_12 : f32 to vector<128x1xf32>
    %32 = arith.addf %31, %30 : vector<128x1xf32>
    %33 = tpu.reciprocal %32 {approx = true} : vector<128x1xf32> -> vector<128x1xf32>
    %c0_13 = arith.constant 0 : index
    %c0_14 = arith.constant 0 : index
    %34 = vector.load %arg6[%c0_13, %c0_14] : memref<128x1xf32, #tpu.memory_space<vmem>>, vector<128x1xf32>
    tpu.vector_store %arg6[%c0_13, %c0_14], %33 {strides = array<i32>} : memref<128x1xf32, #tpu.memory_space<vmem>>, vector<128x1xf32>,
    return
  }
  func.func @transform_0(%arg0: i32) -> (i32, i32) {
    %c0_i32 = arith.constant 0 : i32
    %c0_i32_0 = arith.constant 0 : i32
    return %arg0, %c0_i32 : i32, i32
  }
  func.func @transform_1(%arg0: i32) -> (i32, i32) {
    %c0_i32 = arith.constant 0 : i32
    %c0_i32_0 = arith.constant 0 : i32
    %c0_i32_1 = arith.constant 0 : i32
    return %c0_i32, %c0_i32_0 : i32, i32
  }
  func.func @transform_2(%arg0: i32) -> (i32, i32) {
    %c0_i32 = arith.constant 0 : i32
    %c0_i32_0 = arith.constant 0 : i32
    %c0_i32_1 = arith.constant 0 : i32
    return %c0_i32, %c0_i32_0 : i32, i32
  }
  func.func @transform_3(%arg0: i32) -> (i32, i32) {
    %c0_i32 = arith.constant 0 : i32
    %c0_i32_0 = arith.constant 0 : i32
    %c0_i32_1 = arith.constant 0 : i32
    return %c0_i32, %c0_i32_0 : i32, i32
  }
  func.func @transform_4(%arg0: i32) -> (i32, i32) {
    %c0_i32 = arith.constant 0 : i32
    %c0_i32_0 = arith.constant 0 : i32
    %c0_i32_1 = arith.constant 0 : i32
    return %c0_i32, %c0_i32_0 : i32, i32
  }
  func.func @transform_5(%arg0: i32) -> (i32, i32) {
    %c0_i32 = arith.constant 0 : i32
    %c0_i32_0 = arith.constant 0 : i32
    return %arg0, %c0_i32 : i32, i32
  }
}

</mosaic_0001>

<bundles_post_ra>
// kernel: tpu_custom_call.1
= control target key start
LH: loop header
LB: loop body
LE: loop exit
PB: predicated region body
PF: predicated region fallthrough
CT: control target
= control target key end

     0   :  { %s872_s20 = smov 0   ;;  %s1081_s0 = inlined_call_operand.vmem [shape: f32[512,2], index: 0, kind: input, shape index: {}]   ;;  %s1082_s1 = inlined_call_operand.vmem [shape: f32[2,32], index: 1, kind: input, shape index: {}]   ;;  %s1083_s2 = inlined_call_operand.vmem [shape: f32[1,32], index: 2, kind: input, shape index: {}]   ;;  %s1084_s3 = inlined_call_operand.vmem [shape: f32[1,32], index: 3, kind: input, shape index: {}]   ;;  %s1085_s4 = inlined_call_operand.<no memory space> [shape: f32[1,1], index: 4, kind: input, shape index: {}]   ;;  %s1086_s5 = inlined_call_operand.vmem [shape: f32[512,1], index: 5, kind: output, shape index: {}]  }
   0x1   :  { %v10_v0 = vstv %s1085_s4 }
   0x2   :  { %11 = vst [vmem:[#allocation2] sm:$0x1] %v10_v0 }
   0x3 LB: > { %s735_s21 = sadd.s32 4294967295, %s835_s20   ;;  %p739_p0 = scmp.ge.s32.totalorder %s835_s20, 1  ;;  %s835_s20 = sphi %s872_s20, %s17_s20  }
   0x4   : > { %p190_p1 = scmp.lt.s32.totalorder %s835_s20, 5 }
   0x6   : > { %p191_p2 = pnand %p739_p0, %p190_p1 }
   0x7   : > { %s740_s22 = sshll.u32 (!%p191_p2), %s735_s21, 4 }
   0x8   : > { %194 = sbr.rel (%p191_p2) target bundleno = 373 (0x175), region = 40  ;;  %p219_p3 = scmp.lt.s32.totalorder (!%p191_p2), %s740_s22, 63 }
   0xd   : > { %v837_v1 = vmov 0   ;;  %s1088_s22 = smov (!%p219_p3, %s740_s22), 63  ;;  %v838_v18 = vmov 1   ;;  %v246_v27 = vld [vmem:[%s1082_s1] sm:$0x3]  ;;  %vm497_vm0 = vcmask 261120  }
   0xe   : > { %758 = vset.pattern.permute.xlu2 %v837_v1  ;;  %757 = vset.pattern.permute.xlu1 %v837_v1  ;;  %s741_s4 = sshll.u32 %s1088_s22, 3  ;;  %v915_v29 = vperm.slane %v246_v27, 0  ;;  %v918_v31 = vperm.slane %v246_v27, 1  ;;  %v923_v32 = vld [vmem:[%s1083_s2] ss:$0 sm:$0xff]  ;;  %vm662_vm1 = vcmask 7168  }
   0xf   : > { %756 = vset.pattern.permute.xlu0 %v837_v1  ;;  %s888_s25 = scalar_lea.vmem %s1081_s0, %s741_s4  ;;  %v930_v39 = vld [vmem:[%s1084_s3] ss:$0 sm:$0xff]  ;;  %s1029_s9 = scalar_lea.vmem %s1086_s5, %s741_s4 }
  0x10   : > { %v234_v2 = vld [vmem:[%s888_s25 + $0x20] sm:$0xff]  ;;  %v232_v3 = vld [vmem:[%s888_s25 + $0x10] sm:$0xff]  ;;  %v235_v5 = vld [vmem:[%s888_s25 + $0x28] sm:$0xff] }
  0x11   : > { %v230_v4 = vld [vmem:[%s888_s25] sm:$0xff]  ;;  %270 = vperm.xlu2 %758, %v234_v2   ;;  %260 = vperm.xlu1 %757, %v232_v3   ;;  %v233_v6 = vld [vmem:[%s888_s25 + $0x18] sm:$0xff]  ;;  %v231_v7 = vld [vmem:[%s888_s25 + $0x8] sm:$0xff] }
  0x12   : > { %250 = vperm.xlu0 %756, %v230_v4   ;;  %v238_v8 = vld [vmem:[%s888_s25 + $0x40] sm:$0xff]  ;;  %v237_v9 = vld [vmem:[%s888_s25 + $0x38] sm:$0xff]  ;;  %v236_v10 = vld [vmem:[%s888_s25 + $0x30] sm:$0xff] }
  0x13   : > { %v241_v11 = vld [vmem:[%s888_s25 + $0x58] sm:$0xff]  ;;  %v240_v12 = vld [vmem:[%s888_s25 + $0x50] sm:$0xff]  ;;  %v239_v13 = vld [vmem:[%s888_s25 + $0x48] sm:$0xff] }
  0x14   : > { %v244_v14 = vld [vmem:[%s888_s25 + $0x70] sm:$0xff]  ;;  %v243_v15 = vld [vmem:[%s888_s25 + $0x68] sm:$0xff]  ;;  %v242_v16 = vld [vmem:[%s888_s25 + $0x60] sm:$0xff] }
  0x15   : > { %v245_v17 = vld [vmem:[%s888_s25 + $0x78] sm:$0xff] }
  0x19   : > { %275 = vperm.xlu2 %758, %v235_v5   ;;  %265 = vperm.xlu1 %757, %v233_v6  }
  0x1a   : > { %255 = vperm.xlu0 %756, %v231_v7  }
  0x21   : > { %290 = vperm.xlu2 %758, %v238_v8   ;;  %285 = vperm.xlu1 %757, %v237_v9  }
  0x22   : > { %280 = vperm.xlu0 %756, %v236_v10  }
  0x29   : > { %305 = vperm.xlu2 %758, %v241_v11   ;;  %300 = vperm.xlu1 %757, %v240_v12  }
  0x2a   : > { %295 = vperm.xlu0 %756, %v239_v13  }
  0x31   : > { %320 = vperm.xlu2 %758, %v244_v14   ;;  %315 = vperm.xlu1 %757, %v243_v15  }
  0x32   : > { %310 = vperm.xlu0 %756, %v242_v16  }
  0x39   : > { %760 = vset.pattern.permute.xlu2 %v838_v18  ;;  %759 = vset.pattern.permute.xlu1 %v838_v18 }
  0x3a   : > { %325 = vperm.xlu0 %756, %v245_v17   ;;  %369 = vperm.xlu2 %760, %v231_v7  }
  0x3b   : > { %365 = vperm.xlu1 %759, %v230_v4  }
  0x42   : > { %761 = vset.pattern.permute.xlu0 %v838_v18  ;;  %381 = vperm.xlu2 %760, %v234_v2  }
  0x43   : > { %377 = vperm.xlu1 %759, %v233_v6   ;;  %373 = vperm.xlu0 %761, %v232_v3  }
  0x4a   : > { %389 = vperm.xlu2 %760, %v236_v10  }
  0x4b   : > { %385 = vperm.xlu1 %759, %v235_v5   ;;  %393 = vperm.xlu0 %761, %v237_v9  }
  0x52   : > { %401 = vperm.xlu2 %760, %v239_v13  }
  0x53   : > { %397 = vperm.xlu1 %759, %v238_v8   ;;  %405 = vperm.xlu0 %761, %v240_v12  }
  0x5a   : > { %413 = vperm.xlu2 %760, %v242_v16  }
  0x5b   : > { %409 = vperm.xlu1 %759, %v241_v11   ;;  %417 = vperm.xlu0 %761, %v243_v15  }
  0x62   : > { %425 = vperm.xlu2 %760, %v245_v17  }
  0x63   : > { %421 = vperm.xlu1 %759, %v244_v14  }
  0x6b   : > { %v271_v19 = vpop.permute.xlu2 %270 }
  0x6c   : > { %v333_v49 = vmul.f32 %v915_v29, %v271_v19 }
  0x6e   : > { %v352_v55 = vadd.f32 %v923_v32, %v333_v49 }
  0x73   : > { %v276_v20 = vpop.permute.xlu2 %275 }
  0x74   : > { %v334_v8 = vmul.f32 %v915_v29, %v276_v20 }
  0x76   : > { %v353_v15 = vadd.f32 %v923_v32, %v334_v8 }
  0x7b   : > { %v906_v21 = vpop.permute.xlu2 %290 }
  0x83   : > { %v908_v22 = vpop.permute.xlu2 %305  ;;  %v261_v23 = vpop.permute.xlu1 %260 }
  0x84   : > { %v251_v24 = vpop.permute.xlu0 %250  ;;  %v331_v57 = vmul.f32 %v915_v29, %v261_v23 }
  0x85   : > { %v329_v47 = vmul.f32 %v915_v29, %v251_v24 }
  0x86   : > { %v350_v63 = vadd.f32 %v923_v32, %v331_v57 }
  0x87   : > { %v348_v52 = vadd.f32 %v923_v32, %v329_v47 }
  0x8b   : > { %v910_v25 = vpop.permute.xlu2 %320  ;;  %v266_v26 = vpop.permute.xlu1 %265 }
  0x8c   : > { %v256_v28 = vpop.permute.xlu0 %255  ;;  %v332_v60 = vmul.f32 %v915_v29, %v266_v26 }
  0x8d   : > { %v330_v30 = vmul.f32 %v915_v29, %v256_v28 }
  0x8e   : > { %v351_v6 = vadd.f32 %v923_v32, %v332_v60 }
  0x8f   : > { %v349_v36 = vadd.f32 %v923_v32, %v330_v30 }
  0x93   : > { %v286_v33 = vpop.permute.xlu1 %285 }
  0x94   : > { %v281_v34 = vpop.permute.xlu0 %280  ;;  %v370_v35 = vpop.permute.xlu2 %369  ;;  %v336_v9 = vmul.f32 %v915_v29, %v286_v33  ;;  %v337_v33 = vmul.f32 %v915_v29, %v906_v21 }
  0x95   : > { %v430_v37 = vmul.f32 %v918_v31, %v370_v35  ;;  %v335_v13 = vmul.f32 %v915_v29, %v281_v34 }
  0x96   : > { %v355_v16 = vadd.f32 %v923_v32, %v336_v9  ;;  %v356_v47 = vadd.f32 %v923_v32, %v337_v33 }
  0x97   : > { %v446_v38 = vadd.f32 %v430_v37, %v349_v36  ;;  %v354_v28 = vadd.f32 %v923_v32, %v335_v13 }
  0x99   : > { %v462_v40 = vmax.f32 %v446_v38, 0.0 }
  0x9b   : > { %v301_v41 = vpop.permute.xlu1 %300  ;;  %v482_v42 = vmul.f32 %v930_v39, %v462_v40 }
  0x9c   : > { %v296_v43 = vpop.permute.xlu0 %295  ;;  %v382_v48 = vpop.permute.xlu2 %381  ;;  %v339_v36 = vmul.f32 %v915_v29, %v301_v41 }
  0x9d   : > { %v501_v44 = vsel %vm497_vm0, %v482_v42, 0.0  ;;  %v433_v53 = vmul.f32 %v918_v31, %v382_v48 }
  0x9e   : > { %502 = vadd.xlane.f32.xlu1 %v501_v44  ;;  %v338_v44 = vmul.f32 %v915_v29, %v296_v43 }
  0x9f   : > { %v449_v58 = vadd.f32 %v433_v53, %v352_v55 }
  0xa1   : > { %v465_v2 = vmax.f32 %v449_v58, 0.0  ;;  %v357_v58 = vadd.f32 %v923_v32, %v338_v44 }
  0xa3   : > { %v934_v45 = vpop.permute.xlu1 %315  ;;  %v485_v12 = vmul.f32 %v930_v39, %v465_v2 }
  0xa4   : > { %v936_v46 = vpop.permute.xlu0 %310  ;;  %v390_v61 = vpop.permute.xlu2 %389 }
  0xa5   : > { %v435_v17 = vmul.f32 %v918_v31, %v390_v61  ;;  %v510_v26 = vsel %vm497_vm0, %v485_v12, 0.0 }
  0xa7   : > { %v451_v37 = vadd.f32 %v435_v17, %v354_v28 }
  0xa9   : > { %v467_v21 = vmax.f32 %v451_v37, 0.0 }
  0xac   : > { %v940_v50 = vpop.permute.xlu0 %325  ;;  %v402_v30 = vpop.permute.xlu2 %401 }
  0xad   : > { %v366_v51 = vpop.permute.xlu1 %365 }
  0xae   : > { %v429_v54 = vmul.f32 %v918_v31, %v366_v51  ;;  %v358_v51 = vadd.f32 %v923_v32, %v339_v36 }
  0xb0   : > { %v445_v56 = vadd.f32 %v429_v54, %v348_v52  ;;  %v438_v52 = vmul.f32 %v918_v31, %v402_v30 }
  0xb2   : > { %v461_v59 = vmax.f32 %v445_v56, 0.0 }
  0xb4   : > { %v481_v62 = vmul.f32 %v930_v39, %v461_v59  ;;  %v340_v59 = vmul.f32 %v915_v29, %v908_v22 }
  0xb5   : > { %v378_v0 = vpop.permute.xlu1 %377  ;;  %v374_v1 = vpop.permute.xlu0 %373 }
  0xb6   : > { %v432_v3 = vmul.f32 %v918_v31, %v378_v0  ;;  %v431_v4 = vmul.f32 %v918_v31, %v374_v1  ;;  %v498_v5 = vsel %vm497_vm0, %v481_v62, 0.0  ;;  %v342_v62 = vmul.f32 %v915_v29, %v934_v45  ;;  %v414_v0 = vpop.permute.xlu2 %413 }
  0xb7   : > { %499 = vadd.xlane.f32.xlu0 %v498_v5  ;;  %v487_v1 = vmul.f32 %v930_v39, %v467_v21  ;;  %v359_v5 = vadd.f32 %v923_v32, %v340_v59  ;;  %v441_v45 = vmul.f32 %v918_v31, %v414_v0 }
  0xb8   : > { %v447_v7 = vadd.f32 %v431_v4, %v350_v63  ;;  %v448_v10 = vadd.f32 %v432_v3, %v351_v6  ;;  %v454_v63 = vadd.f32 %v438_v52, %v357_v58  ;;  %v341_v4 = vmul.f32 %v915_v29, %v936_v46  ;;  %v1021_v52 = vld [vmem:[#allocation2] ss:$0 sm:$0xff] }
  0xba   : > { %v463_v11 = vmax.f32 %v447_v7, 0.0  ;;  %v464_v18 = vmax.f32 %v448_v10, 0.0  ;;  %v361_v7 = vadd.f32 %v923_v32, %v342_v62  ;;  %v470_v8 = vmax.f32 %v454_v63, 0.0 }
  0xbc   : > { %v483_v14 = vmul.f32 %v930_v39, %v463_v11  ;;  %v484_v38 = vmul.f32 %v930_v39, %v464_v18  ;;  %v516_v11 = vsel %vm497_vm0, %v487_v1, 0.0  ;;  %v343_v18 = vmul.f32 %v915_v29, %v910_v25 }
  0xbd   : > { %v386_v19 = vpop.permute.xlu1 %385  ;;  %v394_v23 = vpop.permute.xlu0 %393 }
  0xbe   : > { %v434_v20 = vmul.f32 %v918_v31, %v386_v19  ;;  %v436_v24 = vmul.f32 %v918_v31, %v394_v23  ;;  %v504_v27 = vsel %vm497_vm0, %v483_v14, 0.0  ;;  %v507_v54 = vsel %vm497_vm0, %v484_v38, 0.0 }
  0xbf   : > { %511 = vadd.xlane.f32.xlu0 %v510_v26  ;;  %505 = vadd.xlane.f32.xlu2 %v504_v27  ;;  %v490_v23 = vmul.f32 %v930_v39, %v470_v8  ;;  %v426_v26 = vpop.permute.xlu2 %425  ;;  %v344_v27 = vmul.f32 %v915_v29, %v940_v50  ;;  %v362_v33 = vadd.f32 %v923_v32, %v343_v18 }
  0xc0   : > { %v450_v34 = vadd.f32 %v434_v20, %v353_v15  ;;  %v452_v35 = vadd.f32 %v436_v24, %v355_v16  ;;  %v360_v15 = vadd.f32 %v923_v32, %v341_v4  ;;  %v444_v25 = vmul.f32 %v918_v31, %v426_v26 }
  0xc1   : > { %v525_v36 = vsel %vm497_vm0, %v490_v23, 0.0  ;;  %v363_v29 = vadd.f32 %v923_v32, %v344_v27 }
  0xc2   : > { %v466_v40 = vmax.f32 %v450_v34, 0.0  ;;  %v468_v42 = vmax.f32 %v452_v35, 0.0  ;;  %v457_v19 = vadd.f32 %v441_v45, %v360_v15 }
  0xc4   : > { %v486_v48 = vmul.f32 %v930_v39, %v466_v40  ;;  %v488_v49 = vmul.f32 %v930_v39, %v468_v42  ;;  %v473_v34 = vmax.f32 %v457_v19, 0.0  ;;  %v460_v42 = vadd.f32 %v444_v25, %v363_v29 }
  0xc5   : > { %v398_v53 = vpop.permute.xlu1 %397  ;;  %v406_v41 = vpop.permute.xlu0 %405 }
  0xc6   : > { %v437_v55 = vmul.f32 %v918_v31, %v398_v53  ;;  %v439_v56 = vmul.f32 %v918_v31, %v406_v41  ;;  %v513_v43 = vsel %vm497_vm0, %v486_v48, 0.0  ;;  %v519_v57 = vsel %vm497_vm0, %v488_v49, 0.0 }
  0xc7   : > { %514 = vadd.xlane.f32.xlu1 %v513_v43  ;;  %508 = vadd.xlane.f32.xlu2 %v507_v54  ;;  %v476_v49 = vmax.f32 %v460_v42, 0.0 }
  0xc8   : > { %v453_v60 = vadd.f32 %v437_v55, %v356_v47  ;;  %v455_v61 = vadd.f32 %v439_v56, %v358_v51  ;;  %520 = vadd.xlane.f32.xlu0 %v519_v57  ;;  %v493_v47 = vmul.f32 %v930_v39, %v473_v34 }
  0xc9   : > { %v496_v21 = vmul.f32 %v930_v39, %v476_v49 }
  0xca   : > { %v469_v2 = vmax.f32 %v453_v60, 0.0  ;;  %v471_v3 = vmax.f32 %v455_v61, 0.0 }
  0xcb   : > { %v543_v32 = vsel %vm497_vm0, %v496_v21, 0.0 }
  0xcc   : > { %v489_v6 = vmul.f32 %v930_v39, %v469_v2  ;;  %v491_v22 = vmul.f32 %v930_v39, %v471_v3 }
  0xcd   : > { %v410_v9 = vpop.permute.xlu1 %409  ;;  %v418_v10 = vpop.permute.xlu0 %417 }
  0xce   : > { %v440_v12 = vmul.f32 %v918_v31, %v410_v9  ;;  %v442_v13 = vmul.f32 %v918_v31, %v418_v10  ;;  %v522_v46 = vsel %vm497_vm0, %v489_v6, 0.0  ;;  %v528_v14 = vsel %vm497_vm0, %v491_v22, 0.0 }
  0xcf   : > { %523 = vadd.xlane.f32.xlu1 %v522_v46  ;;  %517 = vadd.xlane.f32.xlu2 %v516_v11 }
  0xd0   : > { %v456_v16 = vadd.f32 %v440_v12, %v359_v5  ;;  %v458_v17 = vadd.f32 %v442_v13, %v361_v7  ;;  %529 = vadd.xlane.f32.xlu0 %v528_v14 }
  0xd2   : > { %v472_v20 = vmax.f32 %v456_v16, 0.0  ;;  %v474_v24 = vmax.f32 %v458_v17, 0.0 }
  0xd4   : > { %v492_v28 = vmul.f32 %v930_v39, %v472_v20  ;;  %v494_v30 = vmul.f32 %v930_v39, %v474_v24 }
  0xd5   : > { %v422_v35 = vpop.permute.xlu1 %421 }
  0xd6   : > { %v443_v37 = vmul.f32 %v918_v31, %v422_v35  ;;  %v531_v38 = vsel %vm497_vm0, %v492_v28, 0.0  ;;  %v537_v40 = vsel %vm497_vm0, %v494_v30, 0.0  ;;  %v534_v31 = vsel %vm497_vm0, %v493_v47, 0.0 }
  0xd7   : > { %532 = vadd.xlane.f32.xlu1 %v531_v38  ;;  %526 = vadd.xlane.f32.xlu2 %v525_v36 }
  0xd8   : > { %v459_v50 = vadd.f32 %v443_v37, %v362_v33  ;;  %538 = vadd.xlane.f32.xlu0 %v537_v40 }
  0xda   : > { %v475_v44 = vmax.f32 %v459_v50, 0.0 }
  0xdc   : > { %v495_v48 = vmul.f32 %v930_v39, %v475_v44 }
  0xde   : > { %v540_v51 = vsel %vm497_vm0, %v495_v48, 0.0 }
  0xdf   : > { %541 = vadd.xlane.f32.xlu1 %v540_v51  ;;  %535 = vadd.xlane.f32.xlu2 %v534_v31 }
  0xe7   : > { %544 = vadd.xlane.f32.xlu2 %v543_v32 }
 0x111   : > { %v503_v53 = vpop.xlane.xlu1 %502 }
 0x112   : > { %v551_v41 = vadd.f32 %v1021_v52, %v503_v53 }
 0x114   : > { %v567_v54 = vmax.f32 %v551_v41, 0.0 }
 0x116   : > { %v583_v55 = vsub.f32 0.0, %v567_v54 }
 0x118   : > { %v600_v56 = vmul.f32 1.442695, %v583_v55 }
 0x11a   : > { %765 = vpow2.f32 %v600_v56 }
 0x120   : > { %v766_v43 = vpop.eup %765 }
 0x121   : > { %v631_v57 = vadd.f32 1.0, %v766_v43 }
 0x123   : > { %767 = vrcp.f32 %v631_v57 }
 0x129   : > { %v768_v39 = vpop.eup %767 }
 0x12a   : > { %664 = vst.msk [vmem:[%s1029_s9 + $0x8] sm:$0xff] %vm662_vm1, %v768_v39  ;;  %v500_v58 = vpop.xlane.xlu0 %499 }
 0x12b   : > { %v550_v59 = vadd.f32 %v1021_v52, %v500_v58 }
 0x12d   : > { %v566_v60 = vmax.f32 %v550_v59, 0.0 }
 0x12f   : > { %v582_v61 = vsub.f32 0.0, %v566_v60 }
 0x131   : > { %v598_v62 = vmul.f32 1.442695, %v582_v61 }
 0x132   : > { %v506_v63 = vpop.xlane.xlu2 %505  ;;  %v512_v0 = vpop.xlane.xlu0 %511 }
 0x133   : > { %769 = vpow2.f32 %v598_v62  ;;  %v552_v1 = vadd.f32 %v1021_v52, %v506_v63  ;;  %v554_v2 = vadd.f32 %v1021_v52, %v512_v0 }
 0x135   : > { %v568_v3 = vmax.f32 %v552_v1, 0.0  ;;  %v570_v4 = vmax.f32 %v554_v2, 0.0 }
 0x137   : > { %v584_v5 = vsub.f32 0.0, %v568_v3  ;;  %v586_v6 = vsub.f32 0.0, %v570_v4 }
 0x139   : > { %v770_v22 = vpop.eup %769  ;;  %v602_v7 = vmul.f32 1.442695, %v584_v5  ;;  %v606_v8 = vmul.f32 1.442695, %v586_v6 }
 0x13a   : > { %v630_v45 = vadd.f32 1.0, %v770_v22  ;;  %v515_v9 = vpop.xlane.xlu1 %514  ;;  %v509_v10 = vpop.xlane.xlu2 %508 }
 0x13b   : > { %771 = vpow2.f32 %v602_v7  ;;  %v555_v11 = vadd.f32 %v1021_v52, %v515_v9  ;;  %v553_v12 = vadd.f32 %v1021_v52, %v509_v10  ;;  %v521_v13 = vpop.xlane.xlu0 %520 }
 0x13c   : > { %773 = vrcp.f32 %v630_v45  ;;  %v557_v46 = vadd.f32 %v1021_v52, %v521_v13 }
 0x13d   : > { %775 = vpow2.f32 %v606_v8  ;;  %v571_v14 = vmax.f32 %v555_v11, 0.0  ;;  %v569_v15 = vmax.f32 %v553_v12, 0.0 }
 0x13e   : > { %v573_v16 = vmax.f32 %v557_v46, 0.0 }
 0x13f   : > { %v587_v17 = vsub.f32 0.0, %v571_v14  ;;  %v585_v18 = vsub.f32 0.0, %v569_v15 }
 0x140   : > { %v589_v19 = vsub.f32 0.0, %v573_v16 }
 0x141   : > { %v772_v23 = vpop.eup %771  ;;  %v608_v20 = vmul.f32 1.442695, %v587_v17  ;;  %v604_v24 = vmul.f32 1.442695, %v585_v18 }
 0x142   : > { %v774_v26 = vpop.eup %773  ;;  %v632_v27 = vadd.f32 1.0, %v772_v23  ;;  %v524_v28 = vpop.xlane.xlu1 %523  ;;  %v612_v34 = vmul.f32 1.442695, %v589_v19 }
 0x143   : > { %v518_v30 = vpop.xlane.xlu2 %517  ;;  %v776_v33 = vpop.eup %775  ;;  %663 = vst.msk [vmem:[%s1029_s9] sm:$0xff] %vm662_vm1, %v774_v26  ;;  %777 = vpow2.f32 %v608_v20  ;;  %v558_v35 = vadd.f32 %v1021_v52, %v524_v28 }
 0x144   : > { %v556_v36 = vadd.f32 %v1021_v52, %v518_v30  ;;  %v530_v25 = vpop.xlane.xlu0 %529  ;;  %779 = vrcp.f32 %v632_v27  ;;  %v634_v37 = vadd.f32 1.0, %v776_v33 }
 0x145   : > { %v560_v38 = vadd.f32 %v1021_v52, %v530_v25  ;;  %781 = vpow2.f32 %v604_v24  ;;  %v574_v40 = vmax.f32 %v558_v35, 0.0 }
 0x146   : > { %v572_v29 = vmax.f32 %v556_v36, 0.0  ;;  %783 = vrcp.f32 %v634_v37 }
 0x147   : > { %v576_v50 = vmax.f32 %v560_v38, 0.0  ;;  %785 = vpow2.f32 %v612_v34  ;;  %v590_v42 = vsub.f32 0.0, %v574_v40 }
 0x148   : > { %v588_v44 = vsub.f32 0.0, %v572_v29 }
 0x149   : > { %v592_v47 = vsub.f32 0.0, %v576_v50  ;;  %v778_v48 = vpop.eup %777  ;;  %v614_v49 = vmul.f32 1.442695, %v590_v42 }
 0x14a   : > { %v610_v51 = vmul.f32 1.442695, %v588_v44  ;;  %v780_v31 = vpop.eup %779  ;;  %v635_v21 = vadd.f32 1.0, %v778_v48  ;;  %v533_v32 = vpop.xlane.xlu1 %532 }
 0x14b   : > { %v527_v53 = vpop.xlane.xlu2 %526  ;;  %v782_v41 = vpop.eup %781  ;;  %665 = vst.msk [vmem:[%s1029_s9 + $0x10] sm:$0xff] %vm662_vm1, %v780_v31  ;;  %787 = vpow2.f32 %v614_v49  ;;  %v618_v54 = vmul.f32 1.442695, %v592_v47  ;;  %v561_v55 = vadd.f32 %v1021_v52, %v533_v32 }
 0x14c   : > { %v559_v56 = vadd.f32 %v1021_v52, %v527_v53  ;;  %v539_v43 = vpop.xlane.xlu0 %538  ;;  %v784_v57 = vpop.eup %783  ;;  %789 = vrcp.f32 %v635_v21  ;;  %v633_v39 = vadd.f32 1.0, %v782_v41 }
 0x14d   : > { %v563_v58 = vadd.f32 %v1021_v52, %v539_v43  ;;  %v786_v59 = vpop.eup %785  ;;  %667 = vst.msk [vmem:[%s1029_s9 + $0x20] sm:$0xff] %vm662_vm1, %v784_v57  ;;  %791 = vpow2.f32 %v610_v51  ;;  %v577_v60 = vmax.f32 %v561_v55, 0.0 }
 0x14e   : > { %v575_v61 = vmax.f32 %v559_v56, 0.0  ;;  %793 = vrcp.f32 %v633_v39  ;;  %v637_v62 = vadd.f32 1.0, %v786_v59 }
 0x14f   : > { %v579_v63 = vmax.f32 %v563_v58, 0.0  ;;  %795 = vpow2.f32 %v618_v54  ;;  %v593_v0 = vsub.f32 0.0, %v577_v60 }
 0x150   : > { %v591_v1 = vsub.f32 0.0, %v575_v61  ;;  %797 = vrcp.f32 %v637_v62 }
 0x151   : > { %v595_v2 = vsub.f32 0.0, %v579_v63  ;;  %v788_v3 = vpop.eup %787  ;;  %v620_v4 = vmul.f32 1.442695, %v593_v0 }
 0x152   : > { %v616_v5 = vmul.f32 1.442695, %v591_v1  ;;  %v790_v6 = vpop.eup %789  ;;  %v638_v22 = vadd.f32 1.0, %v788_v3  ;;  %v542_v7 = vpop.xlane.xlu1 %541 }
 0x153   : > { %v536_v8 = vpop.xlane.xlu2 %535  ;;  %v792_v45 = vpop.eup %791  ;;  %668 = vst.msk [vmem:[%s1029_s9 + $0x28] sm:$0xff] %vm662_vm1, %v790_v6  ;;  %799 = vpow2.f32 %v620_v4  ;;  %v624_v9 = vmul.f32 1.442695, %v595_v2  ;;  %v564_v10 = vadd.f32 %v1021_v52, %v542_v7 }
 0x154   : > { %v562_v11 = vadd.f32 %v1021_v52, %v536_v8  ;;  %v794_v12 = vpop.eup %793  ;;  %801 = vrcp.f32 %v638_v22  ;;  %v636_v13 = vadd.f32 1.0, %v792_v45 }
 0x155   : > { %v796_v46 = vpop.eup %795  ;;  %666 = vst.msk [vmem:[%s1029_s9 + $0x18] sm:$0xff] %vm662_vm1, %v794_v12  ;;  %803 = vpow2.f32 %v616_v5  ;;  %v580_v14 = vmax.f32 %v564_v10, 0.0 }
 0x156   : > { %v578_v15 = vmax.f32 %v562_v11, 0.0  ;;  %v798_v16 = vpop.eup %797  ;;  %805 = vrcp.f32 %v636_v13  ;;  %v640_v17 = vadd.f32 1.0, %v796_v46 }
 0x157   : > { %670 = vst.msk [vmem:[%s1029_s9 + $0x38] sm:$0xff] %vm662_vm1, %v798_v16  ;;  %807 = vpow2.f32 %v624_v9  ;;  %v596_v18 = vsub.f32 0.0, %v580_v14 }
 0x158   : > { %v594_v19 = vsub.f32 0.0, %v578_v15  ;;  %809 = vrcp.f32 %v640_v17 }
 0x159   : > { %v800_v23 = vpop.eup %799  ;;  %v626_v20 = vmul.f32 1.442695, %v596_v18 }
 0x15a   : > { %v622_v24 = vmul.f32 1.442695, %v594_v19  ;;  %v802_v26 = vpop.eup %801  ;;  %v641_v27 = vadd.f32 1.0, %v800_v23 }
 0x15b   : > { %v545_v28 = vpop.xlane.xlu2 %544  ;;  %v804_v30 = vpop.eup %803  ;;  %671 = vst.msk [vmem:[%s1029_s9 + $0x40] sm:$0xff] %vm662_vm1, %v802_v26  ;;  %811 = vpow2.f32 %v626_v20 }
 0x15c   : > { %v565_v33 = vadd.f32 %v1021_v52, %v545_v28  ;;  %v806_v34 = vpop.eup %805  ;;  %813 = vrcp.f32 %v641_v27  ;;  %v639_v35 = vadd.f32 1.0, %v804_v30 }
 0x15d   : > { %v808_v36 = vpop.eup %807  ;;  %669 = vst.msk [vmem:[%s1029_s9 + $0x30] sm:$0xff] %vm662_vm1, %v806_v34  ;;  %815 = vpow2.f32 %v622_v24 }
 0x15e   : > { %v581_v25 = vmax.f32 %v565_v33, 0.0  ;;  %v810_v37 = vpop.eup %809  ;;  %817 = vrcp.f32 %v639_v35  ;;  %v643_v38 = vadd.f32 1.0, %v808_v36 }
 0x15f   : > { %673 = vst.msk [vmem:[%s1029_s9 + $0x50] sm:$0xff] %vm662_vm1, %v810_v37 }
 0x160   : > { %v597_v40 = vsub.f32 0.0, %v581_v25  ;;  %819 = vrcp.f32 %v643_v38 }
 0x161   : > { %v812_v29 = vpop.eup %811 }
 0x162   : > { %v628_v52 = vmul.f32 1.442695, %v597_v40  ;;  %v814_v50 = vpop.eup %813  ;;  %v644_v42 = vadd.f32 1.0, %v812_v29 }
 0x163   : > { %v816_v44 = vpop.eup %815  ;;  %674 = vst.msk [vmem:[%s1029_s9 + $0x58] sm:$0xff] %vm662_vm1, %v814_v50 }
 0x164   : > { %821 = vpow2.f32 %v628_v52  ;;  %v818_v47 = vpop.eup %817  ;;  %v642_v48 = vadd.f32 1.0, %v816_v44 }
 0x165   : > { %823 = vrcp.f32 %v644_v42  ;;  %672 = vst.msk [vmem:[%s1029_s9 + $0x48] sm:$0xff] %vm662_vm1, %v818_v47 }
 0x166   : > { %v820_v49 = vpop.eup %819  ;;  %825 = vrcp.f32 %v642_v48 }
 0x167   : > { %676 = vst.msk [vmem:[%s1029_s9 + $0x68] sm:$0xff] %vm662_vm1, %v820_v49 }
 0x16a   : > { %v822_v51 = vpop.eup %821 }
 0x16b   : > { %v824_v31 = vpop.eup %823  ;;  %v645_v21 = vadd.f32 1.0, %v822_v51 }
 0x16c   : > { %677 = vst.msk [vmem:[%s1029_s9 + $0x70] sm:$0xff] %vm662_vm1, %v824_v31  ;;  %v826_v32 = vpop.eup %825 }
 0x16d   : > { %827 = vrcp.f32 %v645_v21  ;;  %675 = vst.msk [vmem:[%s1029_s9 + $0x60] sm:$0xff] %vm662_vm1, %v826_v32 }
 0x173   : > { %v828_v53 = vpop.eup %827 }
 0x174   : > { %678 = vst.msk [vmem:[%s1029_s9 + $0x78] sm:$0xff] %vm662_vm1, %v828_v53 }
 0x175 PF: > { %s17_s20 = sadd.s32 1, %s835_s20  }
 0x176   : > { %p14_p4 = scmp.ge.s32.totalorder %s17_s20, 6  }
 0x178   :  { %16 = sbr.rel (!%p14_p4) target bundleno = 3 (0x3), region = 70 }

</bundles_post_ra>
